<compile_context>
chip_gen: v7x
topology: tpu7x:2x2x1
jax: 0.10.0
libtpu: 0.0.40
codegen_flags: <defaults>
</compile_context>

<pallas_src>
import functools

import jax
import jax.numpy as jnp
from jax.experimental import pallas as pl
from jax.experimental.pallas import tpu as pltpu


def _bert_embed_kernel(tok_ids_s, pos_ids_s,                 # scalar prefetch (SMEM)
                       tok_hbm, pos_hbm,                      # big tables, raw HBM refs
                       seg_ids_ref, seg_tab_ref,              # (T,1) ids, resident seg table
                       gamma_ref, beta_ref,                   # (1,H) LayerNorm params
                       out_ref,                               # (T,H) output tile
                       tok_buf, pos_buf, gsem,                # scratch: gather bufs + DMA sems
                       *, eps, tile_t, n_seg, nsem):
    base = pl.program_id(0) * tile_t

    # ---- manual row gather: NSEM outstanding DMAs per stream -------------
    def start_gather(t):
        slot = jax.lax.rem(t, nsem)
        trow = tok_ids_s[base + t]
        pltpu.make_async_copy(tok_hbm.at[pl.ds(trow, 1), :],
                              tok_buf.at[pl.ds(t, 1), :],
                              gsem.at[0, slot]).start()
        prow = pos_ids_s[base + t]
        pltpu.make_async_copy(pos_hbm.at[pl.ds(prow, 1), :],
                              pos_buf.at[pl.ds(t, 1), :],
                              gsem.at[1, slot]).start()

    def wait_gather(t):
        slot = jax.lax.rem(t, nsem)
        pltpu.make_async_copy(tok_hbm.at[pl.ds(0, 1), :],
                              tok_buf.at[pl.ds(t, 1), :],
                              gsem.at[0, slot]).wait()
        pltpu.make_async_copy(pos_hbm.at[pl.ds(0, 1), :],
                              pos_buf.at[pl.ds(t, 1), :],
                              gsem.at[1, slot]).wait()

    n_prologue = min(nsem, tile_t)

    @pl.loop(0, n_prologue)
    def _(t):
        start_gather(t)

    @pl.loop(0, tile_t)
    def _(t):
        wait_gather(t)

        @pl.when(t + nsem < tile_t)
        def _():
            start_gather(t + nsem)

    # ---- sum of embeddings (f32 accumulation) ----------------------------
    x = tok_buf[...].astype(jnp.float32) + pos_buf[...].astype(jnp.float32)

    seg_ids = seg_ids_ref[...]                      # (T, 1) int32
    seg_tab = seg_tab_ref[...].astype(jnp.float32)  # (n_seg, H), VMEM-resident
    for k in range(n_seg):                          # n_seg is tiny (e.g. 2)
        mask = (seg_ids == k).astype(jnp.float32)   # (T, 1)
        x = x + mask * seg_tab[k:k + 1, :]          # broadcast (T,1)*(1,H)

    # ---- LayerNorm over H -------------------------------------------------
    mean = jnp.mean(x, axis=-1, keepdims=True)
    xc = x - mean
    var = jnp.mean(xc * xc, axis=-1, keepdims=True)
    inv = jax.lax.rsqrt(var + eps)
    y = xc * inv * gamma_ref[...].astype(jnp.float32) + beta_ref[...].astype(jnp.float32)

    # TODO(synk): nn.Dropout is identity in eval mode; training-mode dropout
    # (pltpu.prng_seed / prng_random_bits mask) is not implemented here.
    out_ref[...] = y.astype(out_ref.dtype)


def _round_up(x, m):
    return ((x + m - 1) // m) * m


def bert_embedding(token_ids, segment_ids, position_ids,
                   tok_table, seg_table, pos_table, gamma, beta,
                   eps=1e-5, tile_tokens=512, nsem=8):
    B, S = token_ids.shape
    V, H = tok_table.shape
    P = pos_table.shape[0]
    n_seg = seg_table.shape[0]
    N = B * S

    # Tile size: up to `tile_tokens`, multiple of 8 (sublane-dense output).
    T = min(tile_tokens, _round_up(N, 8))
    N_pad = _round_up(N, T)
    G = N_pad // T

    def prep_ids(ids, rows):
        # clamp ids (bounds safety) and pad to N_pad with a valid row (0)
        flat = jnp.clip(ids.reshape(-1).astype(jnp.int32), 0, rows - 1)
        return jnp.pad(flat, (0, N_pad - N))

    tok_flat = prep_ids(token_ids, V)        # SMEM scalar prefetch
    pos_flat = prep_ids(position_ids, P)     # SMEM scalar prefetch
    seg_2d = prep_ids(segment_ids, n_seg).reshape(N_pad, 1)

    gamma2 = gamma.reshape(1, H)
    beta2 = beta.reshape(1, H)

    grid_spec = pltpu.PrefetchScalarGridSpec(
        num_scalar_prefetch=2,
        grid=(G,),
        in_specs=[
            pl.BlockSpec(memory_space=pl.ANY),                     # token table (HBM)
            pl.BlockSpec(memory_space=pl.ANY),                     # position table (HBM)
            pl.BlockSpec((T, 1), lambda i, tok, pos: (i, 0)),      # segment ids tile
            pl.BlockSpec((n_seg, H), lambda i, tok, pos: (0, 0)),  # segment table (resident)
            pl.BlockSpec((1, H), lambda i, tok, pos: (0, 0)),      # gamma (resident)
            pl.BlockSpec((1, H), lambda i, tok, pos: (0, 0)),      # beta (resident)
        ],
        out_specs=pl.BlockSpec((T, H), lambda i, tok, pos: (i, 0)),
        scratch_shapes=[
            pltpu.VMEM((T, H), tok_table.dtype),       # gathered token rows
            pltpu.VMEM((T, H), pos_table.dtype),       # gathered position rows
            pltpu.SemaphoreType.DMA((2, nsem)),        # rolling gather semaphores
        ],
    )

    out = pl.pallas_call(
        functools.partial(_bert_embed_kernel, eps=eps, tile_t=T,
                          n_seg=n_seg, nsem=nsem),
        out_shape=jax.ShapeDtypeStruct((N_pad, H), jnp.float32),
        grid_spec=grid_spec,
        compiler_params=pltpu.CompilerParams(
            dimension_semantics=("parallel",),          # disjoint output tiles
            vmem_limit_bytes=48 * 1024 * 1024,          # safe on v7x's 64 MiB VMEM
        ),
    )(tok_flat, pos_flat, tok_table, pos_table, seg_2d, seg_table, gamma2, beta2)

    return out[:N].reshape(B, S, H)


def _reference(token_ids, segment_ids, position_ids,
               tok_table, seg_table, pos_table, gamma, beta, eps=1e-5):
    x = (tok_table[token_ids] + seg_table[segment_ids] + pos_table[position_ids])
    mean = jnp.mean(x, axis=-1, keepdims=True)
    var = jnp.mean((x - mean) ** 2, axis=-1, keepdims=True)
    return (x - mean) * jax.lax.rsqrt(var + eps) * gamma + beta


if __name__ == "__main__":
    # Small, deterministic config (mirrors BertConfig fields used by __init__).
    vocab_size = 64
    segment_size = 2
    position_size = 16
    hidden_size = 128
    pad_token_id = 0
    B, S = 2, 8

    key = jax.random.PRNGKey(0)
    k_tok, k_seg, k_pos, k_ids, k_sids = jax.random.split(key, 5)

    # nn.Embedding default init: N(0, 1); padding_idx row zeroed (fwd parity).
    tok_table = jax.random.normal(k_tok, (vocab_size, hidden_size), jnp.float32)
    tok_table = tok_table.at[pad_token_id].set(0.0)
    seg_table = jax.random.normal(k_seg, (segment_size, hidden_size), jnp.float32)
    pos_table = jax.random.normal(k_pos, (position_size, hidden_size), jnp.float32)
    # nn.LayerNorm default init: weight = 1, bias = 0.
    gamma = jnp.ones((hidden_size,), jnp.float32)
    beta = jnp.zeros((hidden_size,), jnp.float32)

    token_ids = jax.random.randint(k_ids, (B, S), 0, vocab_size, dtype=jnp.int32)
    segment_ids = jax.random.randint(k_sids, (B, S), 0, segment_size, dtype=jnp.int32)
    position_ids = jnp.tile(jnp.arange(S, dtype=jnp.int32)[None, :], (B, 1))

    out = bert_embedding(token_ids, segment_ids, position_ids,
                         tok_table, seg_table, pos_table, gamma, beta)
    out = jax.block_until_ready(out)

    ref = _reference(token_ids, segment_ids, position_ids,
                     tok_table, seg_table, pos_table, gamma, beta)
    assert out.shape == (B, S, hidden_size)
    assert jnp.allclose(out, ref, atol=1e-4, rtol=1e-4), "mismatch vs JAX reference"

    print("KERNEL_OK")
</pallas_src>

<mosaic_0001>
module attributes {stable_mosaic.version = 11 : i64} {
  func.func @_bert_embed_kernel(%arg0: i32, %arg1: memref<16xi32, #tpu.memory_space<smem>>, %arg2: memref<16xi32, #tpu.memory_space<smem>>, %arg3: memref<64x128xf32, #tpu.memory_space<any>>, %arg4: memref<16x128xf32, #tpu.memory_space<any>>, %arg5: memref<16x1xi32, #tpu.memory_space<vmem>>, %arg6: memref<2x128xf32, #tpu.memory_space<vmem>>, %arg7: memref<1x128xf32, #tpu.memory_space<vmem>>, %arg8: memref<1x128xf32, #tpu.memory_space<vmem>>, %arg9: memref<16x128xf32, #tpu.memory_space<vmem>>, %arg10: memref<16x128xf32, #tpu.memory_space<vmem>>, %arg11: memref<16x128xf32, #tpu.memory_space<vmem>>, %arg12: memref<2x8x!tpu.dma_semaphore, #tpu.memory_space<semaphore_mem>>) attributes {dimension_semantics = [#tpu.dimension_semantics<parallel>], iteration_bounds = array<i64: 1>, scalar_prefetch = 2 : i64, scratch_operands = 3 : i64, tpu.core_type = #tpu.core_type<tc>, window_params = [{}, {}, {transform_indices = @transform_2, window_bounds = array<i64: 16, 1>}, {pipeline_mode = #tpu.pipeline_mode<synchronous>, transform_indices = @transform_3, window_bounds = array<i64: 2, 128>}, {pipeline_mode = #tpu.pipeline_mode<synchronous>, transform_indices = @transform_4, window_bounds = array<i64: 1, 128>}, {pipeline_mode = #tpu.pipeline_mode<synchronous>, transform_indices = @transform_5, window_bounds = array<i64: 1, 128>}, {transform_indices = @transform_6, window_bounds = array<i64: 16, 128>}]} {
    %c16_i32 = arith.constant 16 : i32
    %0 = arith.muli %arg0, %c16_i32 : i32
    %c0_i32 = arith.constant 0 : i32
    %c8_i32 = arith.constant 8 : i32
    %1 = arith.addi %c0_i32, %c8_i32 : i32
    %c1_i32 = arith.constant 1 : i32
    scf.for %arg13 = %c0_i32 to %1 step %c1_i32  : i32 {
      %c1_i32_24 = arith.constant 1 : i32
      %49 = arith.muli %arg13, %c1_i32_24 : i32
      %c0_i32_25 = arith.constant 0 : i32
      %50 = arith.addi %c0_i32_25, %49 : i32
      %c8_i32_26 = arith.constant 8 : i32
      %51 = arith.remsi %50, %c8_i32_26 : i32
      %52 = arith.addi %0, %50 : i32
      %53 = arith.index_cast %52 : i32 to index
      %54 = memref.load %arg1[%53] : memref<16xi32, #tpu.memory_space<smem>>
      %c0_i32_27 = arith.constant 0 : i32
      %c0_i32_28 = arith.constant 0 : i32
      %55 = tpu.memref_slice %arg3[%54, %c0_i32_28] : memref<64x128xf32, #tpu.memory_space<any>> -> memref<1x128xf32, #tpu.memory_space<any>>
      %c0_i32_29 = arith.constant 0 : i32
      %56 = tpu.memref_slice %arg10[%50, %c0_i32_29] : memref<16x128xf32, #tpu.memory_space<vmem>> -> memref<1x128xf32, #tpu.memory_space<vmem>>
      %57 = tpu.memref_slice %arg12[%c0_i32_27, %51] : memref<2x8x!tpu.dma_semaphore, #tpu.memory_space<semaphore_mem>> -> memref<1x1x!tpu.dma_semaphore, #tpu.memory_space<semaphore_mem>>
      %58 = tpu.memref_squeeze %57 : memref<1x1x!tpu.dma_semaphore, #tpu.memory_space<semaphore_mem>> -> memref<!tpu.dma_semaphore, #tpu.memory_space<semaphore_mem>>
      tpu.enqueue_dma source(%55 : memref<1x128xf32, #tpu.memory_space<any>>) target(%56 : memref<1x128xf32, #tpu.memory_space<vmem>>) target_semaphore(%58 : memref<!tpu.dma_semaphore, #tpu.memory_space<semaphore_mem>>)
      %59 = arith.addi %0, %50 : i32
      %60 = arith.index_cast %59 : i32 to index
      %61 = memref.load %arg2[%60] : memref<16xi32, #tpu.memory_space<smem>>
      %c1_i32_30 = arith.constant 1 : i32
      %c0_i32_31 = arith.constant 0 : i32
      %62 = tpu.memref_slice %arg4[%61, %c0_i32_31] : memref<16x128xf32, #tpu.memory_space<any>> -> memref<1x128xf32, #tpu.memory_space<any>>
      %c0_i32_32 = arith.constant 0 : i32
      %63 = tpu.memref_slice %arg11[%50, %c0_i32_32] : memref<16x128xf32, #tpu.memory_space<vmem>> -> memref<1x128xf32, #tpu.memory_space<vmem>>
      %64 = tpu.memref_slice %arg12[%c1_i32_30, %51] : memref<2x8x!tpu.dma_semaphore, #tpu.memory_space<semaphore_mem>> -> memref<1x1x!tpu.dma_semaphore, #tpu.memory_space<semaphore_mem>>
      %65 = tpu.memref_squeeze %64 : memref<1x1x!tpu.dma_semaphore, #tpu.memory_space<semaphore_mem>> -> memref<!tpu.dma_semaphore, #tpu.memory_space<semaphore_mem>>
      tpu.enqueue_dma source(%62 : memref<1x128xf32, #tpu.memory_space<any>>) target(%63 : memref<1x128xf32, #tpu.memory_space<vmem>>) target_semaphore(%65 : memref<!tpu.dma_semaphore, #tpu.memory_space<semaphore_mem>>)
    }
    %c8_i32_0 = arith.constant 8 : i32
    %c0_i32_1 = arith.constant 0 : i32
    %c16_i32_2 = arith.constant 16 : i32
    %2 = arith.addi %c0_i32_1, %c16_i32_2 : i32
    %c1_i32_3 = arith.constant 1 : i32
    scf.for %arg13 = %c0_i32_1 to %2 step %c1_i32_3  : i32 {
      %c1_i32_24 = arith.constant 1 : i32
      %49 = arith.muli %arg13, %c1_i32_24 : i32
      %c0_i32_25 = arith.constant 0 : i32
      %50 = arith.addi %c0_i32_25, %49 : i32
      %c8_i32_26 = arith.constant 8 : i32
      %51 = arith.remsi %50, %c8_i32_26 : i32
      %c0_i32_27 = arith.constant 0 : i32
      %c0_i32_28 = arith.constant 0 : i32
      %c0_i32_29 = arith.constant 0 : i32
      %52 = tpu.memref_slice %arg3[%c0_i32_28, %c0_i32_29] : memref<64x128xf32, #tpu.memory_space<any>> -> memref<1x128xf32, #tpu.memory_space<any>>
      %c0_i32_30 = arith.constant 0 : i32
      %53 = tpu.memref_slice %arg10[%50, %c0_i32_30] : memref<16x128xf32, #tpu.memory_space<vmem>> -> memref<1x128xf32, #tpu.memory_space<vmem>>
      %54 = tpu.memref_slice %arg12[%c0_i32_27, %51] : memref<2x8x!tpu.dma_semaphore, #tpu.memory_space<semaphore_mem>> -> memref<1x1x!tpu.dma_semaphore, #tpu.memory_space<semaphore_mem>>
      %55 = tpu.memref_squeeze %54 : memref<1x1x!tpu.dma_semaphore, #tpu.memory_space<semaphore_mem>> -> memref<!tpu.dma_semaphore, #tpu.memory_space<semaphore_mem>>
      tpu.wait_dma2 semaphore(%55 : memref<!tpu.dma_semaphore, #tpu.memory_space<semaphore_mem>>) src(%52 : memref<1x128xf32, #tpu.memory_space<any>>) dst(%53 : memref<1x128xf32, #tpu.memory_space<vmem>>)
      %c1_i32_31 = arith.constant 1 : i32
      %c0_i32_32 = arith.constant 0 : i32
      %c0_i32_33 = arith.constant 0 : i32
      %56 = tpu.memref_slice %arg4[%c0_i32_32, %c0_i32_33] : memref<16x128xf32, #tpu.memory_space<any>> -> memref<1x128xf32, #tpu.memory_space<any>>
      %c0_i32_34 = arith.constant 0 : i32
      %57 = tpu.memref_slice %arg11[%50, %c0_i32_34] : memref<16x128xf32, #tpu.memory_space<vmem>> -> memref<1x128xf32, #tpu.memory_space<vmem>>
      %58 = tpu.memref_slice %arg12[%c1_i32_31, %51] : memref<2x8x!tpu.dma_semaphore, #tpu.memory_space<semaphore_mem>> -> memref<1x1x!tpu.dma_semaphore, #tpu.memory_space<semaphore_mem>>
      %59 = tpu.memref_squeeze %58 : memref<1x1x!tpu.dma_semaphore, #tpu.memory_space<semaphore_mem>> -> memref<!tpu.dma_semaphore, #tpu.memory_space<semaphore_mem>>
      tpu.wait_dma2 semaphore(%59 : memref<!tpu.dma_semaphore, #tpu.memory_space<semaphore_mem>>) src(%56 : memref<1x128xf32, #tpu.memory_space<any>>) dst(%57 : memref<1x128xf32, #tpu.memory_space<vmem>>)
      %c8_i32_35 = arith.constant 8 : i32
      %60 = arith.addi %50, %c8_i32_35 : i32
      %c16_i32_36 = arith.constant 16 : i32
      %61 = arith.cmpi slt, %60, %c16_i32_36 : i32
      %62 = arith.extui %61 : i1 to i32
      %c0_i32_37 = arith.constant 0 : i32
      %63 = arith.cmpi ne, %62, %c0_i32_37 : i32
      scf.if %63 {
        %c8_i32_38 = arith.constant 8 : i32
        %64 = arith.addi %50, %c8_i32_38 : i32
        %c8_i32_39 = arith.constant 8 : i32
        %65 = arith.remsi %64, %c8_i32_39 : i32
        %66 = arith.addi %0, %64 : i32
        %67 = arith.index_cast %66 : i32 to index
        %68 = memref.load %arg1[%67] : memref<16xi32, #tpu.memory_space<smem>>
        %c0_i32_40 = arith.constant 0 : i32
        %c0_i32_41 = arith.constant 0 : i32
        %69 = tpu.memref_slice %arg3[%68, %c0_i32_41] : memref<64x128xf32, #tpu.memory_space<any>> -> memref<1x128xf32, #tpu.memory_space<any>>
        %c0_i32_42 = arith.constant 0 : i32
        %70 = tpu.memref_slice %arg10[%64, %c0_i32_42] : memref<16x128xf32, #tpu.memory_space<vmem>> -> memref<1x128xf32, #tpu.memory_space<vmem>>
        %71 = tpu.memref_slice %arg12[%c0_i32_40, %65] : memref<2x8x!tpu.dma_semaphore, #tpu.memory_space<semaphore_mem>> -> memref<1x1x!tpu.dma_semaphore, #tpu.memory_space<semaphore_mem>>
        %72 = tpu.memref_squeeze %71 : memref<1x1x!tpu.dma_semaphore, #tpu.memory_space<semaphore_mem>> -> memref<!tpu.dma_semaphore, #tpu.memory_space<semaphore_mem>>
        tpu.enqueue_dma source(%69 : memref<1x128xf32, #tpu.memory_space<any>>) target(%70 : memref<1x128xf32, #tpu.memory_space<vmem>>) target_semaphore(%72 : memref<!tpu.dma_semaphore, #tpu.memory_space<semaphore_mem>>)
        %73 = arith.addi %0, %64 : i32
        %74 = arith.index_cast %73 : i32 to index
        %75 = memref.load %arg2[%74] : memref<16xi32, #tpu.memory_space<smem>>
        %c1_i32_43 = arith.constant 1 : i32
        %c0_i32_44 = arith.constant 0 : i32
        %76 = tpu.memref_slice %arg4[%75, %c0_i32_44] : memref<16x128xf32, #tpu.memory_space<any>> -> memref<1x128xf32, #tpu.memory_space<any>>
        %c0_i32_45 = arith.constant 0 : i32
        %77 = tpu.memref_slice %arg11[%64, %c0_i32_45] : memref<16x128xf32, #tpu.memory_space<vmem>> -> memref<1x128xf32, #tpu.memory_space<vmem>>
        %78 = tpu.memref_slice %arg12[%c1_i32_43, %65] : memref<2x8x!tpu.dma_semaphore, #tpu.memory_space<semaphore_mem>> -> memref<1x1x!tpu.dma_semaphore, #tpu.memory_space<semaphore_mem>>
        %79 = tpu.memref_squeeze %78 : memref<1x1x!tpu.dma_semaphore, #tpu.memory_space<semaphore_mem>> -> memref<!tpu.dma_semaphore, #tpu.memory_space<semaphore_mem>>
        tpu.enqueue_dma source(%76 : memref<1x128xf32, #tpu.memory_space<any>>) target(%77 : memref<1x128xf32, #tpu.memory_space<vmem>>) target_semaphore(%79 : memref<!tpu.dma_semaphore, #tpu.memory_space<semaphore_mem>>)
      } else {
      }
    }
    %c16_i32_4 = arith.constant 16 : i32
    %c0 = arith.constant 0 : index
    %c0_5 = arith.constant 0 : index
    %3 = vector.load %arg10[%c0, %c0_5] : memref<16x128xf32, #tpu.memory_space<vmem>>, vector<16x128xf32>
    %c0_6 = arith.constant 0 : index
    %c0_7 = arith.constant 0 : index
    %4 = vector.load %arg11[%c0_6, %c0_7] : memref<16x128xf32, #tpu.memory_space<vmem>>, vector<16x128xf32>
    %5 = arith.addf %3, %4 : vector<16x128xf32>
    %c0_8 = arith.constant 0 : index
    %c0_9 = arith.constant 0 : index
    %6 = vector.load %arg5[%c0_8, %c0_9] : memref<16x1xi32, #tpu.memory_space<vmem>>, vector<16x1xi32>
    %c0_10 = arith.constant 0 : index
    %c0_11 = arith.constant 0 : index
    %7 = vector.load %arg6[%c0_10, %c0_11] : memref<2x128xf32, #tpu.memory_space<vmem>>, vector<2x128xf32>
    %c0_i32_12 = arith.constant 0 : i32
    %8 = vector.broadcast %c0_i32_12 : i32 to vector<16x1xi32>
    %9 = arith.cmpi eq, %6, %8 : vector<16x1xi32>
    %10 = arith.extui %9 : vector<16x1xi1> to vector<16x1xi32>
    %11 = arith.sitofp %10 : vector<16x1xi32> to vector<16x1xf32>
    %12 = vector.extract_strided_slice %7 {offsets = [0, 0], sizes = [1, 128], strides = [1, 1]} : vector<2x128xf32> to vector<1x128xf32>
    %13 = vector.broadcast %11 : vector<16x1xf32> to vector<16x128xf32>
    %14 = vector.broadcast %12 : vector<1x128xf32> to vector<16x128xf32>
    %15 = arith.mulf %13, %14 : vector<16x128xf32>
    %16 = arith.addf %5, %15 : vector<16x128xf32>
    %c1_i32_13 = arith.constant 1 : i32
    %17 = vector.broadcast %c1_i32_13 : i32 to vector<16x1xi32>
    %18 = arith.cmpi eq, %6, %17 : vector<16x1xi32>
    %19 = arith.extui %18 : vector<16x1xi1> to vector<16x1xi32>
    %20 = arith.sitofp %19 : vector<16x1xi32> to vector<16x1xf32>
    %21 = vector.extract_strided_slice %7 {offsets = [1, 0], sizes = [1, 128], strides = [1, 1]} : vector<2x128xf32> to vector<1x128xf32>
    %22 = vector.broadcast %20 : vector<16x1xf32> to vector<16x128xf32>
    %23 = vector.broadcast %21 : vector<1x128xf32> to vector<16x128xf32>
    %24 = arith.mulf %22, %23 : vector<16x128xf32>
    %25 = arith.addf %16, %24 : vector<16x128xf32>
    %cst = arith.constant dense<0.000000e+00> : vector<16xf32>
    %26 = vector.multi_reduction <add>, %25, %cst [1] : vector<16x128xf32> to vector<16xf32>
    %27 = vector.shape_cast %26 : vector<16xf32> to vector<16x1xf32>
    %cst_14 = arith.constant 1.280000e+02 : f32
    %28 = vector.broadcast %cst_14 : f32 to vector<16x1xf32>
    %29 = arith.divf %27, %28 : vector<16x1xf32>
    %30 = vector.broadcast %29 : vector<16x1xf32> to vector<16x128xf32>
    %31 = arith.subf %25, %30 : vector<16x128xf32>
    %32 = arith.mulf %31, %31 : vector<16x128xf32>
    %cst_15 = arith.constant dense<0.000000e+00> : vector<16xf32>
    %33 = vector.multi_reduction <add>, %32, %cst_15 [1] : vector<16x128xf32> to vector<16xf32>
    %34 = vector.shape_cast %33 : vector<16xf32> to vector<16x1xf32>
    %cst_16 = arith.constant 1.280000e+02 : f32
    %35 = vector.broadcast %cst_16 : f32 to vector<16x1xf32>
    %36 = arith.divf %34, %35 : vector<16x1xf32>
    %cst_17 = arith.constant 9.99999974E-6 : f32
    %37 = vector.broadcast %cst_17 : f32 to vector<16x1xf32>
    %38 = arith.addf %36, %37 : vector<16x1xf32>
    %39 = math.rsqrt %38 : vector<16x1xf32>
    %40 = vector.broadcast %39 : vector<16x1xf32> to vector<16x128xf32>
    %41 = arith.mulf %31, %40 : vector<16x128xf32>
    %c0_18 = arith.constant 0 : index
    %c0_19 = arith.constant 0 : index
    %42 = vector.load %arg7[%c0_18, %c0_19] : memref<1x128xf32, #tpu.memory_space<vmem>>, vector<1x128xf32>
    %43 = vector.broadcast %42 : vector<1x128xf32> to vector<16x128xf32>
    %44 = arith.mulf %41, %43 : vector<16x128xf32>
    %c0_20 = arith.constant 0 : index
    %c0_21 = arith.constant 0 : index
    %45 = vector.load %arg8[%c0_20, %c0_21] : memref<1x128xf32, #tpu.memory_space<vmem>>, vector<1x128xf32>
    %46 = vector.broadcast %45 : vector<1x128xf32> to vector<16x128xf32>
    %47 = arith.addf %44, %46 : vector<16x128xf32>
    %c0_22 = arith.constant 0 : index
    %c0_23 = arith.constant 0 : index
    %48 = vector.load %arg9[%c0_22, %c0_23] : memref<16x128xf32, #tpu.memory_space<vmem>>, vector<16x128xf32>
    tpu.vector_store %arg9[%c0_22, %c0_23], %47 {strides = array<i32>} : memref<16x128xf32, #tpu.memory_space<vmem>>, vector<16x128xf32>,
    return
  }
  func.func @transform_2(%arg0: i32, %arg1: memref<16xi32, #tpu.memory_space<smem>>, %arg2: memref<16xi32, #tpu.memory_space<smem>>) -> (i32, i32) {
    %c0_i32 = arith.constant 0 : i32
    %c0_i32_0 = arith.constant 0 : i32
    return %arg0, %c0_i32 : i32, i32
  }
  func.func @transform_3(%arg0: i32, %arg1: memref<16xi32, #tpu.memory_space<smem>>, %arg2: memref<16xi32, #tpu.memory_space<smem>>) -> (i32, i32) {
    %c0_i32 = arith.constant 0 : i32
    %c0_i32_0 = arith.constant 0 : i32
    %c0_i32_1 = arith.constant 0 : i32
    return %c0_i32, %c0_i32_0 : i32, i32
  }
  func.func @transform_4(%arg0: i32, %arg1: memref<16xi32, #tpu.memory_space<smem>>, %arg2: memref<16xi32, #tpu.memory_space<smem>>) -> (i32, i32) {
    %c0_i32 = arith.constant 0 : i32
    %c0_i32_0 = arith.constant 0 : i32
    %c0_i32_1 = arith.constant 0 : i32
    return %c0_i32, %c0_i32_0 : i32, i32
  }
  func.func @transform_5(%arg0: i32, %arg1: memref<16xi32, #tpu.memory_space<smem>>, %arg2: memref<16xi32, #tpu.memory_space<smem>>) -> (i32, i32) {
    %c0_i32 = arith.constant 0 : i32
    %c0_i32_0 = arith.constant 0 : i32
    %c0_i32_1 = arith.constant 0 : i32
    return %c0_i32, %c0_i32_0 : i32, i32
  }
  func.func @transform_6(%arg0: i32, %arg1: memref<16xi32, #tpu.memory_space<smem>>, %arg2: memref<16xi32, #tpu.memory_space<smem>>) -> (i32, i32) {
    %c0_i32 = arith.constant 0 : i32
    %c0_i32_0 = arith.constant 0 : i32
    return %arg0, %c0_i32 : i32, i32
  }
}

</mosaic_0001>

<bundles_post_ra>
// kernel: tpu_custom_call.1
= control target key start
LH: loop header
LB: loop body
LE: loop exit
PB: predicated region body
PF: predicated region fallthrough
CT: control target
= control target key end

     0   :  { %s832_s0 = inlined_call_operand.vmem [shape: s32[16], index: 0, kind: input, shape index: {}]   ;;  %s833_s2 = inlined_call_operand.hbm [shape: f32[64,128], index: 2, kind: input, shape index: {}]   ;;  %s834_s3 = inlined_call_operand.vmem [shape: f32[16,128], index: 3, kind: input, shape index: {}]   ;;  %s835_s4 = inlined_call_operand.vmem [shape: s32[16,1], index: 4, kind: input, shape index: {}]   ;;  %s836_s5 = inlined_call_operand.vmem [shape: f32[2,128], index: 5, kind: input, shape index: {}]   ;;  %s837_s6 = inlined_call_operand.vmem [shape: f32[1,128], index: 6, kind: input, shape index: {}]   ;;  %s838_s7 = inlined_call_operand.vmem [shape: f32[1,128], index: 7, kind: input, shape index: {}]   ;;  %s839_s8 = inlined_call_operand.hbm [shape: f32[16,128], index: 8, kind: output, shape index: {}]   ;;  %s840_s1 = inlined_call_operand.vmem [shape: s32[16], index: 1, kind: input, shape index: {}]  }
   0x1   :  { %s13_s29 = sshll.u32 %s832_s0, 4  ;;  %s17_s10 = sshll.u32 %s840_s1, 4  ;;  %s14_s29 = int_to_ptr.vmem [resolvable:$true] %s13_s29  ;;  %s18_s10 = int_to_ptr.vmem [resolvable:$true] %s17_s10 }
   0x2   :  { %s555_s11 = scalar_lea.vmem %s14_s29, 16  ;;  %p560_p1 = scmp.lt.s32.totalorder %s14_s29, %s14_s29 }
   0x3   :  { %p556_p0 = scmp.ne.s32.totalorder %s14_s29, %s555_s11  ;;  %p561_p2 = scmp.lt.s32.totalorder %s555_s11, %s555_s11 }
   0x5   :  { %p562_p3 = por %p561_p2, %p560_p1 }
   0x7   :  { %p563_p4 = pnand %p562_p3, %p556_p0 }
   0x9   :  { %566 = shalt.err (!%p563_p4)  }
   0xa   :  { %s673_s12 = smov [#allocation6]   ;;  %s567_s13 = scalar_lea.vmem %s18_s10, 16 }
   0xb   :  { %16 = dma.vmem_to_smem %s14_s29, 16, %s673_s12, [#allocation5] }
   0xc   :  { %p568_p5 = scmp.ne.s32.totalorder %s18_s10, %s567_s13  ;;  %p572_p6 = scmp.lt.s32.totalorder %s18_s10, %s18_s10 }
   0xd   :  { %p573_p7 = scmp.lt.s32.totalorder %s567_s13, %s567_s13 }
   0xf   :  { %p574_p8 = por %p573_p7, %p572_p6 }
  0x11   :  { %p575_p9 = pnand %p574_p8, %p568_p5 }
  0x13   :  { %578 = shalt.err (!%p575_p9)  }
  0x14   :  { %s674_s0 = smov [#allocation7]  }
  0x15   :  { %20 = dma.vmem_to_smem %s18_s10, 16, %s674_s0, [#allocation5] }
  0x16   :  { %657 = dma.done.wait [#allocation5], 32 }
  0x17   :  { %658 = vsyncadd [#allocation5], 4294967264 }
  0x18   :  { %22 = sfence }
  0x19   :  { %23 = vsyncpa [#allocation9], 0  ;;  %s732_s1 = smov 0  }
  0x1a LB: > { %p39_p10 = scmp.lt.s32.totalorder %s667_s1, 0  ;;  %s40_s14 = ssub.s32 0, %s667_s1  ;;  %s667_s1 = sphi %s732_s1, %s38_s1  }
  0x1b   : > { %s487_s15 = smin.u32 %s667_s1, %s40_s14  ;;  %s46_s16 = sld [smem:[#allocation6 + %s667_s1]] }
  0x1c   : > { %s42_s17 = sand.u32 7, %s487_s15   ;;  %s49_s19 = scalar_lea.vmem [#allocation2], %s667_s1 }
  0x1d   : > { %s43_s18 = ssub.s32 0, %s42_s17  ;;  %s58_s20 = sshll.u32 %s49_s19, 4  ;;  %s59_s20 = int_to_ptr.vmem [resolvable:$true] %s58_s20 }
  0x1e   : > { %s842_s18 = smov (!%p39_p10, %s43_s18), %s42_s17  ;;  %s745_s21 = sld [smem:[#allocation7 + %s667_s1]] }
  0x1f   : > { %s50_s23 = scalar_lea.sflag [#allocation4], %s842_s18  ;;  %s581_s9 = scalar_lea.hbm %s833_s2, 1024 }
  0x20   : > { %s442_s24 = scalar_lea.sflag %s50_s23, 8 [#allocation4] }
  0x21   : > { %s488_s22 = sshll.u32 %s46_s16, 4 }
  0x22   : > { %s48_s27 = scalar_lea.hbm %s833_s2, %s488_s22 }
  0x23   : > { %s579_s28 = scalar_lea.hbm %s48_s27, 16  ;;  %p582_p12 = scmp.lt.u32.totalorder %s48_s27, %s833_s2 }
  0x24   : > { %p580_p11 = scmp.ne.s32.totalorder %s48_s27, %s579_s28  ;;  %p583_p13 = scmp.lt.u32.totalorder %s581_s9, %s579_s28 }
  0x25   : > { %p585_p1 = scmp.lt.u32.totalorder %s579_s28, %s48_s27 }
  0x26   : > { %p584_p0 = por %p583_p13, %p582_p12 }
  0x28   : > { %p586_p2 = por %p585_p1, %p584_p0 }
  0x2a   : > { %p587_p3 = pnand %p586_p2, %p580_p11 }
  0x2c   : > { %590 = shalt.err (!%p587_p3)  }
  0x2d   : > { %s591_s0 = scalar_lea.vmem %s59_s20, 16  ;;  %s675_s14 = smov [#allocation2]  }
  0x2e   : > { %p592_p4 = scmp.ne.s32.totalorder %s59_s20, %s591_s0  ;;  %s593_s15 = sshll.u32 %s675_s14, 4  ;;  %s761_s15 = int_to_ptr.vmem [resolvable:$false] %s593_s15 }
  0x2f   : > { %s595_s16 = scalar_lea.vmem %s761_s15, 256  ;;  %p596_p5 = scmp.lt.s32.totalorder %s59_s20, %s761_s15 }
  0x30   : > { %p597_p6 = scmp.lt.s32.totalorder %s595_s16, %s591_s0 }
  0x32   : > { %p598_p7 = por %p597_p6, %p596_p5 }
  0x34   : > { %p599_p8 = pnand %p598_p7, %p592_p4 }
  0x36   : > { %602 = shalt.err (!%p599_p8)  }
  0x37   : > { %61 = dma.hbm_to_vmem [thread:$0]  %s48_s27, 16, %s59_s20, %s50_s23 }
  0x38   : > { %s63_s19 = scalar_lea.vmem %s834_s3, %s745_s21  ;;  %s64_s22 = scalar_lea.vmem [#allocation3], %s667_s1 }
  0x39   : > { %v84_v0 = vld [vmem:[%s63_s19] sm:$0x1] }
  0x3a   : > { %85 = vst [vmem:[%s64_s22] sm:$0x1] %v84_v0 }
  0x3b   : > { %110 = vsyncadd %s442_s24, 16  ;;  %s38_s1 = sadd.s32 1, %s667_s1  }
  0x3c   : > { %p35_p9 = scmp.ge.s32.totalorder %s38_s1, 8  }
  0x3d   :  { %s775_s25 = smov (%p35_p9), 0  }
  0x3e   :  { %37 = sbr.rel (!%p35_p9) target bundleno = 26 (0x1a), region = 171 }
  0x45 LB: > { %p117_p10 = scmp.lt.s32.totalorder %s671_s25, 0  ;;  %s118_s20 = ssub.s32 0, %s671_s25  ;;  %s671_s25 = sphi %s775_s25, %s116_s25  }
  0x46   : > { %s489_s21 = smin.u32 %s671_s25, %s118_s20 }
  0x47   : > { %s120_s23 = sand.u32 7, %s489_s21  }
  0x48   : > { %s121_s24 = ssub.s32 0, %s120_s23 }
  0x49   : > { %s844_s24 = smov (!%p117_p10, %s121_s24), %s120_s23 }
  0x4a   : > { %s123_s26 = scalar_lea.sflag [#allocation4], %s844_s24 }
  0x4b   : > { %659 = dma.done.wait %s123_s26, 16 }
  0x4c   : > { %660 = vsyncadd %s123_s26, 4294967280  ;;  %s447_s1 = scalar_lea.sflag %s123_s26, 8 [#allocation4] }
  0x4d   : > { %661 = dma.done.wait %s447_s1, 16 }
  0x4e   : > { %662 = vsyncadd %s447_s1, 4294967280  ;;  %s131_s27 = sadd.s32 8, %s671_s25 }
  0x4f   : > { %p490_p11 = scmp.ge.s32.totalorder %s131_s27, 16 }
  0x50   : > { %p136_p12 = scmp.lt.s32.totalorder (!%p490_p11), %s131_s27, 0  ;;  %s137_s28 = ssub.s32 (!%p490_p11), 0, %s131_s27 }
  0x51   : > { %135 = sbr.rel (%p490_p11) target bundleno = 114 (0x72), region = 69  ;;  %s491_s29 = smin.u32 (!%p490_p11), %s137_s28, %s131_s27 }
  0x52   : > { %s143_s30 = sld [smem:[#allocation6 + %s131_s27]] (!%p490_p11)  ;;  %s139_s10 = sand.u32 (!%p490_p11), 7, %s491_s29  }
  0x53   : > { %s140_s11 = ssub.s32 (!%p490_p11), 0, %s139_s10  ;;  %s450_s12 = scalar_lea.vmem (!%p490_p11), [#allocation2], %s671_s25 }
  0x54   : > { %s451_s13 = scalar_lea.vmem (!%p490_p11), %s450_s12, 8 [#allocation2]  ;;  %s159_s14 = sld [smem:[#allocation7 + %s131_s27]] (!%p490_p11) }
  0x55   : > { %s155_s0 = sshll.u32 (!%p490_p11), %s451_s13, 4  ;;  %s156_s0 = int_to_ptr.vmem [resolvable:$true] %s155_s0 }
  0x58   : > { %s846_s11 = smov (!%p136_p12, %s140_s11), %s139_s10  ;;  %s492_s17 = sshll.u32 %s143_s30, 4 }
  0x59   : > { %s147_s18 = scalar_lea.sflag [#allocation4], %s846_s11  ;;  %s145_s21 = scalar_lea.hbm %s833_s2, %s492_s17 }
  0x5a   : > { %s457_s19 = scalar_lea.sflag %s147_s18, 8 [#allocation4]  ;;  %s603_s23 = scalar_lea.hbm %s145_s21, 16 }
  0x5b   : > { %p604_p13 = scmp.ne.s32.totalorder %s145_s21, %s603_s23  ;;  %p606_p0 = scmp.lt.u32.totalorder %s145_s21, %s833_s2 }
  0x5c   : > { %p607_p1 = scmp.lt.u32.totalorder %s581_s9, %s603_s23  ;;  %p609_p3 = scmp.lt.u32.totalorder %s603_s23, %s145_s21 }
  0x5e   : > { %p608_p2 = por %p607_p1, %p606_p0 }
  0x60   : > { %p610_p4 = por %p609_p3, %p608_p2 }
  0x62   : > { %p611_p5 = pnand %p610_p4, %p604_p13 }
  0x64   : > { %614 = shalt.err (!%p611_p5)  }
  0x65   : > { %s615_s27 = scalar_lea.vmem %s156_s0, 16  ;;  %p620_p7 = scmp.lt.s32.totalorder %s156_s0, %s761_s15 }
  0x66   : > { %p616_p6 = scmp.ne.s32.totalorder %s156_s0, %s615_s27  ;;  %p621_p8 = scmp.lt.s32.totalorder %s595_s16, %s615_s27 }
  0x68   : > { %p622_p9 = por %p621_p8, %p620_p7 }
  0x6a   : > { %p623_p10 = pnand %p622_p9, %p616_p6 }
  0x6c   : > { %626 = shalt.err (!%p623_p10)  }
  0x6d   : > { %158 = dma.hbm_to_vmem [thread:$0]  %s145_s21, 16, %s156_s0, %s147_s18 }
  0x6e   : > { %s160_s10 = scalar_lea.vmem %s834_s3, %s159_s14  ;;  %s454_s11 = scalar_lea.vmem [#allocation3], %s671_s25 }
  0x6f   : > { %v181_v1 = vld [vmem:[%s160_s10] sm:$0x1] }
  0x70   : > { %494 = vst [vmem:[%s454_s11 + $0x8] sm:$0x1] %v181_v1 }
  0x71   : > { %207 = vsyncadd %s457_s19, 16 }
  0x72 PF: > { %s116_s25 = sadd.s32 1, %s671_s25  }
  0x73   : > { %p113_p11 = scmp.ge.s32.totalorder %s116_s25, 16  }
  0x74   :  { %v214_v2 = vld [vmem:[%s835_s4] sm:$0xff] (%p113_p11)  ;;  %v215_v3 = vld [vmem:[%s835_s4 + $0x8] sm:$0xff] (%p113_p11)  ;;  %v676_v4 = vmov (%p113_p11), 0   ;;  %v677_v5 = vmov (%p113_p11), 0.0   ;;  %v233_v12 = vlaneseq (%p113_p11)  ;;  %s678_s16 = smov (%p113_p11), [#allocation8]  }
  0x75   :  { %115 = sbr.rel (!%p113_p11) target bundleno = 69 (0x45), region = 182  ;;  %540 = vset.pattern.permute.xlu0 (%p113_p11), %v676_v4  ;;  %vm217_vm0 = vcmp.eq.s32.totalorder (%p113_p11), %v214_v2, 0  ;;  %vm218_vm1 = vcmp.eq.s32.totalorder (%p113_p11), %v215_v3, 0  ;;  %vm241_vm2 = vcmp.eq.s32.totalorder (%p113_p11), %v214_v2, 1  ;;  %vm242_vm3 = vcmp.eq.s32.totalorder (%p113_p11), %v215_v3, 1  ;;  %v208_v19 = vld [vmem:[#allocation2] sm:$0xff] (%p113_p11) }
  0x76   :  { %v495_v6 = vsel (%p113_p11), %vm217_vm0, 1.0, %v677_v5  ;;  %v496_v7 = vsel (%p113_p11), %vm218_vm1, 1.0, %v677_v5  ;;  %v497_v8 = vsel (%p113_p11), %vm241_vm2, 1.0, %v677_v5  ;;  %v498_v9 = vsel (%p113_p11), %vm242_vm3, 1.0, %v677_v5  ;;  %v216_v15 = vld [vmem:[%s836_s5] sm:$0x3] (%p113_p11) }
  0x77   :  { %v541_v10 = vpack.i.bf16 (%p113_p11), %v496_v7, %v495_v6  ;;  %v546_v11 = vpack.i.bf16 (%p113_p11), %v498_v9, %v497_v8  ;;  %v234_v13 = vshrl.u32 (%p113_p11), %v233_v12, 7  ;;  %v210_v20 = vld [vmem:[#allocation3] sm:$0xff] (%p113_p11)  ;;  %v209_v27 = vld [vmem:[#allocation2 + $0x8] sm:$0xff] (%p113_p11)  ;;  %v211_v28 = vld [vmem:[#allocation3 + $0x8] sm:$0xff] (%p113_p11)  ;;  %s313_s25 = sshll.u32 (%p113_p11), %s678_s16, 4  ;;  %s314_s25 = int_to_ptr.vmem [resolvable:$true] %s313_s25 }
  0x78   :  { %v212_v24 = vadd.f32 (%p113_p11), %v210_v20, %v208_v19  ;;  %v213_v34 = vadd.f32 (%p113_p11), %v211_v28, %v209_v27  ;;  %v499_v54 = vld [vmem:[%s837_s6] ss:$0 sm:$0xff] (%p113_p11)  ;;  %s627_s14 = scalar_lea.vmem (%p113_p11), %s314_s25, 256  ;;  %p632_p13 = scmp.lt.s32.totalorder (%p113_p11), %s314_s25, %s314_s25 }
  0x79   :  { %542 = vperm.xlu0 (%p113_p11), %540, %v541_v10   ;;  %v235_v14 = vsub.s32 (%p113_p11), 0, %v234_v13  ;;  %v259_v17 = vsub.s32 (%p113_p11), 1, %v234_v13  ;;  %v500_v56 = vld [vmem:[%s838_s7] ss:$0 sm:$0xff] (%p113_p11)  ;;  %p628_p12 = scmp.ne.s32.totalorder (%p113_p11), %s314_s25, %s627_s14  ;;  %p633_p0 = scmp.lt.s32.totalorder (%p113_p11), %s627_s14, %s627_s14 }
  0x7b   :  { %v236_v16 = vrot.slane (%p113_p11), %v216_v15, %v235_v14  ;;  %v260_v25 = vrot.slane (%p113_p11), %v216_v15, %v259_v17  ;;  %p634_p1 = por (%p113_p11), %p633_p0, %p632_p13 }
  0x7d   :  { %547 = vperm.xlu0 %540, %v546_v11   ;;  %p635_p2 = pnand %p634_p1, %p628_p12 }
  0xf8   :  { %v543_v18 = vpop.permute.xlu0 %542 }
  0xf9   :  { %v544_v21 = vunpack.i.l.bf16 %v543_v18  ;;  %v545_v22 = vunpack.i.h.bf16 %v543_v18 }
  0xfb   :  { %v237_v23 = vmul.f32 %v544_v21, %v236_v16  ;;  %v238_v31 = vmul.f32 %v545_v22, %v236_v16 }
  0xfc   :  { %v548_v26 = vpop.permute.xlu0 %547 }
  0xfd   :  { %v550_v29 = vunpack.i.h.bf16 %v548_v26  ;;  %v549_v30 = vunpack.i.l.bf16 %v548_v26  ;;  %v239_v32 = vadd.f32 %v237_v23, %v212_v24  ;;  %v240_v37 = vadd.f32 %v238_v31, %v213_v34 }
  0xff   :  { %v261_v33 = vmul.f32 %v549_v30, %v260_v25  ;;  %v262_v36 = vmul.f32 %v550_v29, %v260_v25 }
 0x101   :  { %v263_v35 = vadd.f32 %v261_v33, %v239_v32  ;;  %v264_v38 = vadd.f32 %v262_v36, %v240_v37 }
 0x103   :  { %265 = vadd.xlane.f32.xlu1 %v263_v35 }
 0x107   :  { %267 = vadd.xlane.f32.xlu1 %v264_v38 }
 0x190   :  { %v266_v39 = vpop.xlane.xlu1 %265 }
 0x191   :  { %v270_v40 = vmul.f32 0.0078125, %v266_v39 }
 0x193   :  { %v272_v41 = vsub.f32 %v263_v35, %v270_v40 }
 0x194   :  { %v268_v42 = vpop.xlane.xlu1 %267 }
 0x195   :  { %v271_v43 = vmul.f32 0.0078125, %v268_v42  ;;  %v274_v44 = vmul.f32 %v272_v41, %v272_v41 }
 0x197   :  { %v273_v45 = vsub.f32 %v264_v38, %v271_v43  ;;  %276 = vadd.xlane.f32.xlu0 %v274_v44 }
 0x199   :  { %v275_v46 = vmul.f32 %v273_v45, %v273_v45 }
 0x19b   :  { %278 = vadd.xlane.f32.xlu1 %v275_v46 }
 0x224   :  { %v277_v47 = vpop.xlane.xlu0 %276 }
 0x225   :  { %v280_v48 = vmul.f32 0.0078125, %v277_v47 }
 0x227   :  { %v282_v49 = vadd.f32 1e-05, %v280_v48 }
 0x228   :  { %v279_v50 = vpop.xlane.xlu1 %278 }
 0x229   :  { %551 = vrsqrt.f32 %v282_v49  ;;  %v281_v51 = vmul.f32 0.0078125, %v279_v50 }
 0x22b   :  { %v283_v52 = vadd.f32 1e-05, %v281_v51 }
 0x22d   :  { %553 = vrsqrt.f32 %v283_v52 }
 0x233   :  { %v552_v53 = vpop.eup %551 }
 0x234   :  { %v286_v55 = vmul.f32 %v552_v53, %v272_v41 }
 0x236   :  { %v295_v57 = vmul.f32 %v499_v54, %v286_v55 }
 0x237   :  { %v554_v58 = vpop.eup %553 }
 0x238   :  { %v287_v59 = vmul.f32 %v554_v58, %v273_v45  ;;  %v304_v60 = vadd.f32 %v500_v56, %v295_v57 }
 0x23a   :  { %v296_v61 = vmul.f32 %v499_v54, %v287_v59  ;;  %306 = vst [vmem:[#allocation8] sm:$0xff] %v304_v60 }
 0x23c   :  { %v305_v62 = vadd.f32 %v500_v56, %v296_v61 }
 0x23e   :  { %307 = vst [vmem:[#allocation8 + $0x8] sm:$0xff] %v305_v62 }
 0x23f   :  { %638 = shalt.err (!%p635_p2)
}
 0x240   :  { %s639_s18 = scalar_lea.hbm %s839_s8, 256 }
 0x241   :  { %p640_p3 = scmp.ne.s32.totalorder %s839_s8, %s639_s18  ;;  %p643_p4 = scmp.lt.u32.totalorder %s639_s18, %s839_s8 }
 0x243   :  { %p645_p5 = pnand %p643_p4, %p640_p3 }
 0x245   :  { %648 = shalt.err (!%p645_p5)
}
 0x246   :  { %s679_s23 = smov 128   ;;  %s680_s24 = smov 8  }
 0x247   :  { %319 = dma.vmem_to_hbm [thread:$0]  %s314_s25, 256, %s839_s8, [#allocation9], %s679_s23, %s679_s23, %s680_s24  }
 0x248   :  { %663 = dma.done.wait [#allocation9], 256  }
 0x249   :  { %664 = vsyncadd [#allocation9], 4294967040 }
 0x24a   :  { %323 = vsyncpa [#allocation9], 1 }
 0x24b   :  { %324 = vsyncmov [#allocation4] }
 0x24e   :  { %s325_s28 = vpop.sfrf %324 }
 0x24f   :  { %p501_p6 = scmp.ne.s32.totalorder %s325_s28, 0 }
 0x251   :  { %329 = shalt.err (%p501_p6)  }
 0x252   :  { %331 = vsyncmov [#allocation4 + $0x1] }
 0x255   :  { %s332_s27 = vpop.sfrf %331 }
 0x256   :  { %p502_p7 = scmp.ne.s32.totalorder %s332_s27, 0 }
 0x258   :  { %336 = shalt.err (%p502_p7)  }
 0x259   :  { %338 = vsyncmov [#allocation4 + $0x2] }
 0x25c   :  { %s339_s29 = vpop.sfrf %338 }
 0x25d   :  { %p503_p8 = scmp.ne.s32.totalorder %s339_s29, 0 }
 0x25f   :  { %343 = shalt.err (%p503_p8)  }
 0x260   :  { %345 = vsyncmov [#allocation4 + $0x3] }
 0x263   :  { %s346_s30 = vpop.sfrf %345 }
 0x264   :  { %p504_p9 = scmp.ne.s32.totalorder %s346_s30, 0 }
 0x266   :  { %350 = shalt.err (%p504_p9)  }
 0x267   :  { %352 = vsyncmov [#allocation4 + $0x4] }
 0x26a   :  { %s353_s8 = vpop.sfrf %352 }
 0x26b   :  { %p505_p10 = scmp.ne.s32.totalorder %s353_s8, 0 }
 0x26d   :  { %357 = shalt.err (%p505_p10)  }
 0x26e   :  { %359 = vsyncmov [#allocation4 + $0x5] }
 0x271   :  { %s360_s10 = vpop.sfrf %359 }
 0x272   :  { %p506_p11 = scmp.ne.s32.totalorder %s360_s10, 0 }
 0x274   :  { %364 = shalt.err (%p506_p11)  }
 0x275   :  { %366 = vsyncmov [#allocation4 + $0x6] }
 0x278   :  { %s367_s11 = vpop.sfrf %366 }
 0x279   :  { %p507_p12 = scmp.ne.s32.totalorder %s367_s11, 0 }
 0x27b   :  { %371 = shalt.err (%p507_p12)  }
 0x27c   :  { %373 = vsyncmov [#allocation4 + $0x7] }
 0x27f   :  { %s374_s12 = vpop.sfrf %373 }
 0x280   :  { %p508_p13 = scmp.ne.s32.totalorder %s374_s12, 0 }
 0x282   :  { %378 = shalt.err (%p508_p13)  }
 0x283   :  { %380 = vsyncmov [#allocation4 + $0x8] }
 0x286   :  { %s381_s13 = vpop.sfrf %380 }
 0x287   :  { %p509_p0 = scmp.ne.s32.totalorder %s381_s13, 0 }
 0x289   :  { %385 = shalt.err (%p509_p0)  }
 0x28a   :  { %387 = vsyncmov [#allocation4 + $0x9] }
 0x28d   :  { %s388_s0 = vpop.sfrf %387 }
 0x28e   :  { %p510_p1 = scmp.ne.s32.totalorder %s388_s0, 0 }
 0x290   :  { %392 = shalt.err (%p510_p1)  }
 0x291   :  { %394 = vsyncmov [#allocation4 + $0xa] }
 0x294   :  { %s395_s17 = vpop.sfrf %394 }
 0x295   :  { %p511_p2 = scmp.ne.s32.totalorder %s395_s17, 0 }
 0x297   :  { %399 = shalt.err (%p511_p2)  }
 0x298   :  { %401 = vsyncmov [#allocation4 + $0xb] }
 0x29b   :  { %s402_s2 = vpop.sfrf %401 }
 0x29c   :  { %p512_p3 = scmp.ne.s32.totalorder %s402_s2, 0 }
 0x29e   :  { %406 = shalt.err (%p512_p3)  }
 0x29f   :  { %408 = vsyncmov [#allocation4 + $0xc] }
 0x2a2   :  { %s409_s3 = vpop.sfrf %408 }
 0x2a3   :  { %p513_p4 = scmp.ne.s32.totalorder %s409_s3, 0 }
 0x2a5   :  { %413 = shalt.err (%p513_p4)  }
 0x2a6   :  { %415 = vsyncmov [#allocation4 + $0xd] }
 0x2a9   :  { %s416_s4 = vpop.sfrf %415 }
 0x2aa   :  { %p514_p5 = scmp.ne.s32.totalorder %s416_s4, 0 }
 0x2ac   :  { %420 = shalt.err (%p514_p5)  }
 0x2ad   :  { %422 = vsyncmov [#allocation4 + $0xe] }
 0x2b0   :  { %s423_s5 = vpop.sfrf %422 }
 0x2b1   :  { %p515_p6 = scmp.ne.s32.totalorder %s423_s5, 0 }
 0x2b3   :  { %427 = shalt.err (%p515_p6)  }
 0x2b4   :  { %429 = vsyncmov [#allocation4 + $0xf] }
 0x2b7   :  { %s430_s9 = vpop.sfrf %429 }
 0x2b8   :  { %p516_p7 = scmp.ne.s32.totalorder %s430_s9, 0 }
 0x2ba   :  { %434 = shalt.err (%p516_p7)  }

</bundles_post_ra>
